<compile_context>
chip_gen: v5e
topology: v5e:2x2
jax: 0.10.0
libtpu: 0.0.40
codegen_flags: <defaults>
</compile_context>

<pallas_src>
import numpy as np
import jax
import jax.numpy as jnp
from jax.experimental import pallas as pl
from jax.experimental.pallas import tpu as pltpu

EPS = 1e-5


# --------------------------- torch-like parameters ---------------------------
def _bn(key, c):
    k1, k2, k3, k4 = jax.random.split(key, 4)
    gamma = 1.0 + 0.1 * jax.random.normal(k1, (1, c), jnp.float32)
    beta = 0.1 * jax.random.normal(k2, (1, c), jnp.float32)
    mean = 0.1 * jax.random.normal(k3, (1, c), jnp.float32)
    var = 0.5 + jnp.abs(jax.random.normal(k4, (1, c), jnp.float32))
    scale = gamma / jnp.sqrt(var + EPS)
    shift = beta - mean * scale
    return scale, shift


def _dense(key, cin, cout):
    k1, k2 = jax.random.split(key)
    w = 0.3 * jax.random.normal(k1, (cin, cout), jnp.float32)
    b = 0.1 * jax.random.normal(k2, (1, cout), jnp.float32)
    return w, b


def init_params(key, cfg):
    ks = jax.random.split(key, 12)
    gL = cfg["gazeSeqSize"] // 2
    hL = cfg["headSeqSize"] // 2
    oL = cfg["objectSeqSize"] // 12
    feat_dim = 32 * (gL // 2) + 64 * (hL // 2) + 32 * ((oL // 2) // 2)

    gaze_w, gaze_b = _dense(ks[0], 2, 32)
    head_w, head_b = _dense(ks[2], 2, 64)
    obj1_w, obj1_b = _dense(ks[4], 12, 64)
    obj2_w, obj2_b = _dense(ks[6], 64, 32)
    fc1_w, fc1_b = _dense(ks[8], feat_dim, 128)
    fc2_w, fc2_b = _dense(ks[10], 128, cfg["clusterSize"])
    cluster = jax.random.normal(ks[11], (cfg["clusterSize"], 2), jnp.float32)

    return dict(
        gaze=(gaze_w, gaze_b, *_bn(ks[1], 32)),
        head=(head_w, head_b, *_bn(ks[3], 64)),
        obj1=(obj1_w, obj1_b, *_bn(ks[5], 64)),
        obj2=(obj2_w, obj2_b, *_bn(ks[7], 32)),
        fc1=(fc1_w, fc1_b, *_bn(ks[9], 128)),
        fc2=(fc2_w, fc2_b),
        cluster=cluster,
    )
    # TODO(synk): SalCNN / saliency branch is defined in __init__ but unused in
    # forward(), so it is intentionally not instantiated here.


# --------------------------- kernel-side param prep ---------------------------
def prepare_kernel_params(params, cfg):
    """Host-side (one-time) re-parameterization: BN folding, block-diagonal
    even/odd-phase conv weights, tiled biases, and torch->natural row
    permutation of fc1. Zero runtime cost."""
    gS, hS, oS = cfg["gazeSeqSize"], cfg["headSeqSize"], cfg["objectSeqSize"]
    gL, hL, oL = gS // 2, hS // 2, oS // 12
    gLp, hLp = gL // 2, hL // 2
    oL1 = oL // 2
    oL2 = oL1 // 2

    def fold(w, b, sc, sh):
        # (x@w + b)*sc + sh == x@(w*sc) + (b*sc + sh)
        w, b, sc, sh = (np.asarray(a, np.float32) for a in (w, b, sc, sh))
        return w * sc, b * sc + sh

    def blockdiag(wf, L_in, L_out, phase):
        # input cols: l*cin + c  (l in [0, L_in));  output cols: l'*cout + o
        cin, cout = wf.shape
        big = np.zeros((L_in * cin, L_out * cout), np.float32)
        for lp in range(L_out):
            r0 = (2 * lp + phase) * cin
            big[r0:r0 + cin, lp * cout:(lp + 1) * cout] = wf
        return big

    def tile_bias(bf, L_out):
        return np.tile(bf, (1, L_out))            # col = l'*cout + o -> bf[o]

    gwf, gbf = fold(*params["gaze"])
    hwf, hbf = fold(*params["head"])
    o1wf, o1bf = fold(*params["obj1"])
    o2wf, o2bf = fold(*params["obj2"])

    gwe, gwo = blockdiag(gwf, gL, gLp, 0), blockdiag(gwf, gL, gLp, 1)
    hwe, hwo = blockdiag(hwf, hL, hLp, 0), blockdiag(hwf, hL, hLp, 1)
    o1e, o1o = blockdiag(o1wf, oL, oL1, 0), blockdiag(o1wf, oL, oL1, 1)
    o2e, o2o = blockdiag(o2wf, oL1, oL2, 0), blockdiag(o2wf, oL1, oL2, 1)
    gbt, hbt = tile_bias(gbf, gLp), tile_bias(hbf, hLp)
    o1bt, o2bt = tile_bias(o1bf, oL1), tile_bias(o2bf, oL2)

    # fc1: fold BN, permute rows from torch (C*L) flatten order to the kernel's
    # natural (L*C) order, split per branch so no concat is needed in-kernel.
    w1, b1, sc1, sh1 = (np.asarray(a, np.float32) for a in params["fc1"])
    w1f = w1 * sc1
    b1f = b1 * sc1 + sh1

    def nat_perm(C, L):
        # perm[l*C + c] = c*L + l
        l = np.repeat(np.arange(L), C)
        c = np.tile(np.arange(C), L)
        return c * L + l

    gw_w, hw_w = 32 * gLp, 64 * hLp
    w1g = w1f[nat_perm(32, gLp)]
    w1h = w1f[gw_w + nat_perm(64, hLp)]
    w1o = w1f[gw_w + hw_w + nat_perm(32, oL2)]

    w2, b2 = (np.asarray(a, np.float32) for a in params["fc2"])
    cluster = np.asarray(params["cluster"], np.float32)

    arrs = (gwe, gwo, gbt, hwe, hwo, hbt, o1e, o1o, o1bt, o2e, o2o, o2bt,
            w1g, w1h, w1o, b1f, w2, b2, cluster)
    return tuple(jnp.asarray(a) for a in arrs)


# --------------------------- fused forward (one pallas_call) ------------------
def fixationnet_forward(kernel_params, x, cfg):
    B = x.shape[0]
    gS, hS, oS = cfg["gazeSeqSize"], cfg["headSeqSize"], cfg["objectSeqSize"]

    # Trivial lane slices of the (B, 128) input; everything else happens in-kernel.
    xg = x[:, 0:gS]                       # (B, gL*2)   col = l*2 + c
    xh = x[:, gS:gS + hS]                 # (B, hL*2)
    xo = x[:, gS + hS:gS + hS + oS]       # (B, oL*12)

    def kernel(xg_ref, xh_ref, xo_ref,
               gwe_ref, gwo_ref, gb_ref,
               hwe_ref, hwo_ref, hb_ref,
               o1e_ref, o1o_ref, o1b_ref,
               o2e_ref, o2o_ref, o2b_ref,
               w1g_ref, w1h_ref, w1o_ref, b1_ref,
               w2_ref, b2_ref, cl_ref, o_ref):

        def conv_bn_relu_pool(inp, we, wo, b):
            # Conv1d(k=1)+BN(folded)+ReLU on both time phases, then MaxPool1d(2).
            ye = jnp.maximum(jnp.dot(inp, we, preferred_element_type=jnp.float32) + b, 0.0)
            yo = jnp.maximum(jnp.dot(inp, wo, preferred_element_type=jnp.float32) + b, 0.0)
            return jnp.maximum(ye, yo)

        xg_v, xh_v, xo_v = xg_ref[...], xh_ref[...], xo_ref[...]
        cur_gaze = xg_v[:, 0:2]

        gfeat = conv_bn_relu_pool(xg_v, gwe_ref[...], gwo_ref[...], gb_ref[...])   # (B,128)
        hfeat = conv_bn_relu_pool(xh_v, hwe_ref[...], hwo_ref[...], hb_ref[...])   # (B,256)
        s1    = conv_bn_relu_pool(xo_v, o1e_ref[...], o1o_ref[...], o1b_ref[...])  # (B,256)
        ofeat = conv_bn_relu_pool(s1,   o2e_ref[...], o2o_ref[...], o2b_ref[...])  # (B,64)

        # fc1 (BN folded, rows pre-permuted & split per branch) + ReLU
        h = (jnp.dot(gfeat, w1g_ref[...], preferred_element_type=jnp.float32)
             + jnp.dot(hfeat, w1h_ref[...], preferred_element_type=jnp.float32)
             + jnp.dot(ofeat, w1o_ref[...], preferred_element_type=jnp.float32)
             + b1_ref[...])
        h = jnp.maximum(h, 0.0)

        # fc2 + softmax + cluster matmul + residual gaze
        logits = jnp.dot(h, w2_ref[...], preferred_element_type=jnp.float32) + b2_ref[...]
        m = jnp.max(logits, axis=1, keepdims=True)
        e = jnp.exp(logits - m)
        probs = e * pl.reciprocal(jnp.sum(e, axis=1, keepdims=True), approx=True)
        o_ref[...] = (jnp.dot(probs, cl_ref[...], preferred_element_type=jnp.float32)
                      + cur_gaze)

    n_in = 3 + len(kernel_params)
    return pl.pallas_call(
        kernel,
        out_shape=jax.ShapeDtypeStruct((B, 2), jnp.float32),
        in_specs=[pl.BlockSpec(memory_space=pltpu.MemorySpace.VMEM)] * n_in,
        out_specs=pl.BlockSpec(memory_space=pltpu.MemorySpace.VMEM),
    )(xg, xh, xo, *kernel_params)


# --------------------------- pure-JAX reference (torch semantics) -------------
def reference_forward(params, x, cfg):
    B = x.shape[0]
    gS, hS, oS = cfg["gazeSeqSize"], cfg["headSeqSize"], cfg["objectSeqSize"]
    gL, hL, oL = gS // 2, hS // 2, oS // 12
    current_gaze = x[:, 0:2]
    gaze = x[:, 0:gS].reshape(B, gL, 2)
    head = x[:, gS:gS + hS].reshape(B, hL, 2)
    obj = x[:, gS + hS:gS + hS + oS].reshape(B, oL, 12)

    def branch(seq, w, b, sc, sh):
        y = jnp.einsum("blc,cd->bld", seq, w) + b
        y = jnp.maximum(y * sc + sh, 0.0)
        L, C = y.shape[1], y.shape[2]
        Lp = L // 2
        return y[:, :2 * Lp].reshape(B, Lp, 2, C).max(axis=2)

    def flat(y):  # torch's (B, C, L) -> reshape(B, C*L)
        return y.transpose(0, 2, 1).reshape(B, -1)

    gy = flat(branch(gaze, *params["gaze"]))
    hy = flat(branch(head, *params["head"]))
    oy = flat(branch(branch(obj, *params["obj1"]), *params["obj2"]))
    feat = jnp.concatenate([gy, hy, oy], axis=1)
    w1, b1, sc, sh = params["fc1"]
    h = jnp.maximum((feat @ w1 + b1) * sc + sh, 0.0)
    w2, b2 = params["fc2"]
    p = jax.nn.softmax(h @ w2 + b2, axis=1)
    return p @ params["cluster"] + current_gaze


# --------------------------- main ---------------------------------------------
if __name__ == "__main__":
    cfg = dict(gazeSeqSize=16,      # gazeSeqLength = 8, 2 features
               headSeqSize=16,      # headSeqLength = 8, 2 features
               objectSeqSize=96,    # objectSeqLength = 8, 12 features
               saliencySize=24 * 24,  # unused by forward()
               clusterSize=16)

    key = jax.random.PRNGKey(0)
    kp, kx = jax.random.split(key)
    params = init_params(kp, cfg)
    kparams = prepare_kernel_params(params, cfg)

    B = 2
    in_dim = cfg["gazeSeqSize"] + cfg["headSeqSize"] + cfg["objectSeqSize"]
    x = jax.random.normal(kx, (B, in_dim), jnp.float32)

    fwd = jax.jit(lambda xx: fixationnet_forward(kparams, xx, cfg))
    out = jax.block_until_ready(fwd(x))
    assert out.shape == (B, 2)

    ref = reference_forward(params, x, cfg)
    np.testing.assert_allclose(np.asarray(out), np.asarray(ref),
                               atol=1e-2, rtol=1e-2)
    print("KERNEL_OK")
</pallas_src>

<mosaic_0001>
module attributes {stable_mosaic.version = 11 : i64} {
  func.func @kernel(%arg0: memref<2x16xf32, #tpu.memory_space<vmem>>, %arg1: memref<2x16xf32, #tpu.memory_space<vmem>>, %arg2: memref<2x96xf32, #tpu.memory_space<vmem>>, %arg3: memref<16x128xf32, #tpu.memory_space<vmem>>, %arg4: memref<16x128xf32, #tpu.memory_space<vmem>>, %arg5: memref<1x128xf32, #tpu.memory_space<vmem>>, %arg6: memref<16x256xf32, #tpu.memory_space<vmem>>, %arg7: memref<16x256xf32, #tpu.memory_space<vmem>>, %arg8: memref<1x256xf32, #tpu.memory_space<vmem>>, %arg9: memref<96x256xf32, #tpu.memory_space<vmem>>, %arg10: memref<96x256xf32, #tpu.memory_space<vmem>>, %arg11: memref<1x256xf32, #tpu.memory_space<vmem>>, %arg12: memref<256x64xf32, #tpu.memory_space<vmem>>, %arg13: memref<256x64xf32, #tpu.memory_space<vmem>>, %arg14: memref<1x64xf32, #tpu.memory_space<vmem>>, %arg15: memref<128x128xf32, #tpu.memory_space<vmem>>, %arg16: memref<256x128xf32, #tpu.memory_space<vmem>>, %arg17: memref<64x128xf32, #tpu.memory_space<vmem>>, %arg18: memref<1x128xf32, #tpu.memory_space<vmem>>, %arg19: memref<128x16xf32, #tpu.memory_space<vmem>>, %arg20: memref<1x16xf32, #tpu.memory_space<vmem>>, %arg21: memref<16x2xf32, #tpu.memory_space<vmem>>, %arg22: memref<2x2xf32, #tpu.memory_space<vmem>>) attributes {dimension_semantics = [], scalar_prefetch = 0 : i64, scratch_operands = 0 : i64, tpu.core_type = #tpu.core_type<tc>} {
    %c0 = arith.constant 0 : index
    %c0_0 = arith.constant 0 : index
    %0 = vector.load %arg0[%c0, %c0_0] : memref<2x16xf32, #tpu.memory_space<vmem>>, vector<2x16xf32>
    %c0_1 = arith.constant 0 : index
    %c0_2 = arith.constant 0 : index
    %1 = vector.load %arg1[%c0_1, %c0_2] : memref<2x16xf32, #tpu.memory_space<vmem>>, vector<2x16xf32>
    %c0_3 = arith.constant 0 : index
    %c0_4 = arith.constant 0 : index
    %2 = vector.load %arg2[%c0_3, %c0_4] : memref<2x96xf32, #tpu.memory_space<vmem>>, vector<2x96xf32>
    %3 = vector.extract_strided_slice %0 {offsets = [0, 0], sizes = [2, 2], strides = [1, 1]} : vector<2x16xf32> to vector<2x2xf32>
    %c0_5 = arith.constant 0 : index
    %c0_6 = arith.constant 0 : index
    %4 = vector.load %arg3[%c0_5, %c0_6] : memref<16x128xf32, #tpu.memory_space<vmem>>, vector<16x128xf32>
    %c0_7 = arith.constant 0 : index
    %c0_8 = arith.constant 0 : index
    %5 = vector.load %arg4[%c0_7, %c0_8] : memref<16x128xf32, #tpu.memory_space<vmem>>, vector<16x128xf32>
    %c0_9 = arith.constant 0 : index
    %c0_10 = arith.constant 0 : index
    %6 = vector.load %arg5[%c0_9, %c0_10] : memref<1x128xf32, #tpu.memory_space<vmem>>, vector<1x128xf32>
    %cst = arith.constant dense<0.000000e+00> : vector<2x128xf32>
    %7 = tpu.matmul %0, %4, %cst {dimension_numbers = #tpu.dot_dimension_numbers<[1], [0], [0], [1], [0, 0, 1, 1], [], []>} : vector<2x16xf32>, vector<16x128xf32>, vector<2x128xf32> -> vector<2x128xf32>
    %8 = vector.broadcast %6 : vector<1x128xf32> to vector<2x128xf32>
    %9 = arith.addf %7, %8 : vector<2x128xf32>
    %cst_11 = arith.constant 0.000000e+00 : f32
    %10 = vector.broadcast %cst_11 : f32 to vector<2x128xf32>
    %11 = arith.maximumf %9, %10 : vector<2x128xf32>
    %cst_12 = arith.constant dense<0.000000e+00> : vector<2x128xf32>
    %12 = tpu.matmul %0, %5, %cst_12 {dimension_numbers = #tpu.dot_dimension_numbers<[1], [0], [0], [1], [0, 0, 1, 1], [], []>} : vector<2x16xf32>, vector<16x128xf32>, vector<2x128xf32> -> vector<2x128xf32>
    %13 = vector.broadcast %6 : vector<1x128xf32> to vector<2x128xf32>
    %14 = arith.addf %12, %13 : vector<2x128xf32>
    %cst_13 = arith.constant 0.000000e+00 : f32
    %15 = vector.broadcast %cst_13 : f32 to vector<2x128xf32>
    %16 = arith.maximumf %14, %15 : vector<2x128xf32>
    %17 = arith.maximumf %11, %16 : vector<2x128xf32>
    %c0_14 = arith.constant 0 : index
    %c0_15 = arith.constant 0 : index
    %18 = vector.load %arg6[%c0_14, %c0_15] : memref<16x256xf32, #tpu.memory_space<vmem>>, vector<16x256xf32>
    %c0_16 = arith.constant 0 : index
    %c0_17 = arith.constant 0 : index
    %19 = vector.load %arg7[%c0_16, %c0_17] : memref<16x256xf32, #tpu.memory_space<vmem>>, vector<16x256xf32>
    %c0_18 = arith.constant 0 : index
    %c0_19 = arith.constant 0 : index
    %20 = vector.load %arg8[%c0_18, %c0_19] : memref<1x256xf32, #tpu.memory_space<vmem>>, vector<1x256xf32>
    %cst_20 = arith.constant dense<0.000000e+00> : vector<2x256xf32>
    %21 = tpu.matmul %1, %18, %cst_20 {dimension_numbers = #tpu.dot_dimension_numbers<[1], [0], [0], [1], [0, 0, 1, 1], [], []>} : vector<2x16xf32>, vector<16x256xf32>, vector<2x256xf32> -> vector<2x256xf32>
    %22 = vector.broadcast %20 : vector<1x256xf32> to vector<2x256xf32>
    %23 = arith.addf %21, %22 : vector<2x256xf32>
    %cst_21 = arith.constant 0.000000e+00 : f32
    %24 = vector.broadcast %cst_21 : f32 to vector<2x256xf32>
    %25 = arith.maximumf %23, %24 : vector<2x256xf32>
    %cst_22 = arith.constant dense<0.000000e+00> : vector<2x256xf32>
    %26 = tpu.matmul %1, %19, %cst_22 {dimension_numbers = #tpu.dot_dimension_numbers<[1], [0], [0], [1], [0, 0, 1, 1], [], []>} : vector<2x16xf32>, vector<16x256xf32>, vector<2x256xf32> -> vector<2x256xf32>
    %27 = vector.broadcast %20 : vector<1x256xf32> to vector<2x256xf32>
    %28 = arith.addf %26, %27 : vector<2x256xf32>
    %cst_23 = arith.constant 0.000000e+00 : f32
    %29 = vector.broadcast %cst_23 : f32 to vector<2x256xf32>
    %30 = arith.maximumf %28, %29 : vector<2x256xf32>
    %31 = arith.maximumf %25, %30 : vector<2x256xf32>
    %c0_24 = arith.constant 0 : index
    %c0_25 = arith.constant 0 : index
    %32 = vector.load %arg9[%c0_24, %c0_25] : memref<96x256xf32, #tpu.memory_space<vmem>>, vector<96x256xf32>
    %c0_26 = arith.constant 0 : index
    %c0_27 = arith.constant 0 : index
    %33 = vector.load %arg10[%c0_26, %c0_27] : memref<96x256xf32, #tpu.memory_space<vmem>>, vector<96x256xf32>
    %c0_28 = arith.constant 0 : index
    %c0_29 = arith.constant 0 : index
    %34 = vector.load %arg11[%c0_28, %c0_29] : memref<1x256xf32, #tpu.memory_space<vmem>>, vector<1x256xf32>
    %cst_30 = arith.constant dense<0.000000e+00> : vector<2x256xf32>
    %35 = tpu.matmul %2, %32, %cst_30 {dimension_numbers = #tpu.dot_dimension_numbers<[1], [0], [0], [1], [0, 0, 1, 1], [], []>} : vector<2x96xf32>, vector<96x256xf32>, vector<2x256xf32> -> vector<2x256xf32>
    %36 = vector.broadcast %34 : vector<1x256xf32> to vector<2x256xf32>
    %37 = arith.addf %35, %36 : vector<2x256xf32>
    %cst_31 = arith.constant 0.000000e+00 : f32
    %38 = vector.broadcast %cst_31 : f32 to vector<2x256xf32>
    %39 = arith.maximumf %37, %38 : vector<2x256xf32>
    %cst_32 = arith.constant dense<0.000000e+00> : vector<2x256xf32>
    %40 = tpu.matmul %2, %33, %cst_32 {dimension_numbers = #tpu.dot_dimension_numbers<[1], [0], [0], [1], [0, 0, 1, 1], [], []>} : vector<2x96xf32>, vector<96x256xf32>, vector<2x256xf32> -> vector<2x256xf32>
    %41 = vector.broadcast %34 : vector<1x256xf32> to vector<2x256xf32>
    %42 = arith.addf %40, %41 : vector<2x256xf32>
    %cst_33 = arith.constant 0.000000e+00 : f32
    %43 = vector.broadcast %cst_33 : f32 to vector<2x256xf32>
    %44 = arith.maximumf %42, %43 : vector<2x256xf32>
    %45 = arith.maximumf %39, %44 : vector<2x256xf32>
    %c0_34 = arith.constant 0 : index
    %c0_35 = arith.constant 0 : index
    %46 = vector.load %arg12[%c0_34, %c0_35] : memref<256x64xf32, #tpu.memory_space<vmem>>, vector<256x64xf32>
    %c0_36 = arith.constant 0 : index
    %c0_37 = arith.constant 0 : index
    %47 = vector.load %arg13[%c0_36, %c0_37] : memref<256x64xf32, #tpu.memory_space<vmem>>, vector<256x64xf32>
    %c0_38 = arith.constant 0 : index
    %c0_39 = arith.constant 0 : index
    %48 = vector.load %arg14[%c0_38, %c0_39] : memref<1x64xf32, #tpu.memory_space<vmem>>, vector<1x64xf32>
    %cst_40 = arith.constant dense<0.000000e+00> : vector<2x64xf32>
    %49 = tpu.matmul %45, %46, %cst_40 {dimension_numbers = #tpu.dot_dimension_numbers<[1], [0], [0], [1], [0, 0, 1, 1], [], []>} : vector<2x256xf32>, vector<256x64xf32>, vector<2x64xf32> -> vector<2x64xf32>
    %50 = vector.broadcast %48 : vector<1x64xf32> to vector<2x64xf32>
    %51 = arith.addf %49, %50 : vector<2x64xf32>
    %cst_41 = arith.constant 0.000000e+00 : f32
    %52 = vector.broadcast %cst_41 : f32 to vector<2x64xf32>
    %53 = arith.maximumf %51, %52 : vector<2x64xf32>
    %cst_42 = arith.constant dense<0.000000e+00> : vector<2x64xf32>
    %54 = tpu.matmul %45, %47, %cst_42 {dimension_numbers = #tpu.dot_dimension_numbers<[1], [0], [0], [1], [0, 0, 1, 1], [], []>} : vector<2x256xf32>, vector<256x64xf32>, vector<2x64xf32> -> vector<2x64xf32>
    %55 = vector.broadcast %48 : vector<1x64xf32> to vector<2x64xf32>
    %56 = arith.addf %54, %55 : vector<2x64xf32>
    %cst_43 = arith.constant 0.000000e+00 : f32
    %57 = vector.broadcast %cst_43 : f32 to vector<2x64xf32>
    %58 = arith.maximumf %56, %57 : vector<2x64xf32>
    %59 = arith.maximumf %53, %58 : vector<2x64xf32>
    %c0_44 = arith.constant 0 : index
    %c0_45 = arith.constant 0 : index
    %60 = vector.load %arg15[%c0_44, %c0_45] : memref<128x128xf32, #tpu.memory_space<vmem>>, vector<128x128xf32>
    %cst_46 = arith.constant dense<0.000000e+00> : vector<2x128xf32>
    %61 = tpu.matmul %17, %60, %cst_46 {dimension_numbers = #tpu.dot_dimension_numbers<[1], [0], [0], [1], [0, 0, 1, 1], [], []>} : vector<2x128xf32>, vector<128x128xf32>, vector<2x128xf32> -> vector<2x128xf32>
    %c0_47 = arith.constant 0 : index
    %c0_48 = arith.constant 0 : index
    %62 = vector.load %arg16[%c0_47, %c0_48] : memref<256x128xf32, #tpu.memory_space<vmem>>, vector<256x128xf32>
    %cst_49 = arith.constant dense<0.000000e+00> : vector<2x128xf32>
    %63 = tpu.matmul %31, %62, %cst_49 {dimension_numbers = #tpu.dot_dimension_numbers<[1], [0], [0], [1], [0, 0, 1, 1], [], []>} : vector<2x256xf32>, vector<256x128xf32>, vector<2x128xf32> -> vector<2x128xf32>
    %64 = arith.addf %61, %63 : vector<2x128xf32>
    %c0_50 = arith.constant 0 : index
    %c0_51 = arith.constant 0 : index
    %65 = vector.load %arg17[%c0_50, %c0_51] : memref<64x128xf32, #tpu.memory_space<vmem>>, vector<64x128xf32>
    %cst_52 = arith.constant dense<0.000000e+00> : vector<2x128xf32>
    %66 = tpu.matmul %59, %65, %cst_52 {dimension_numbers = #tpu.dot_dimension_numbers<[1], [0], [0], [1], [0, 0, 1, 1], [], []>} : vector<2x64xf32>, vector<64x128xf32>, vector<2x128xf32> -> vector<2x128xf32>
    %67 = arith.addf %64, %66 : vector<2x128xf32>
    %c0_53 = arith.constant 0 : index
    %c0_54 = arith.constant 0 : index
    %68 = vector.load %arg18[%c0_53, %c0_54] : memref<1x128xf32, #tpu.memory_space<vmem>>, vector<1x128xf32>
    %69 = vector.broadcast %68 : vector<1x128xf32> to vector<2x128xf32>
    %70 = arith.addf %67, %69 : vector<2x128xf32>
    %cst_55 = arith.constant 0.000000e+00 : f32
    %71 = vector.broadcast %cst_55 : f32 to vector<2x128xf32>
    %72 = arith.maximumf %70, %71 : vector<2x128xf32>
    %c0_56 = arith.constant 0 : index
    %c0_57 = arith.constant 0 : index
    %73 = vector.load %arg19[%c0_56, %c0_57] : memref<128x16xf32, #tpu.memory_space<vmem>>, vector<128x16xf32>
    %cst_58 = arith.constant dense<0.000000e+00> : vector<2x16xf32>
    %74 = tpu.matmul %72, %73, %cst_58 {dimension_numbers = #tpu.dot_dimension_numbers<[1], [0], [0], [1], [0, 0, 1, 1], [], []>} : vector<2x128xf32>, vector<128x16xf32>, vector<2x16xf32> -> vector<2x16xf32>
    %c0_59 = arith.constant 0 : index
    %c0_60 = arith.constant 0 : index
    %75 = vector.load %arg20[%c0_59, %c0_60] : memref<1x16xf32, #tpu.memory_space<vmem>>, vector<1x16xf32>
    %76 = vector.broadcast %75 : vector<1x16xf32> to vector<2x16xf32>
    %77 = arith.addf %74, %76 : vector<2x16xf32>
    %cst_61 = arith.constant dense<0xFF800000> : vector<2xf32>
    %78 = vector.multi_reduction <maximumf>, %77, %cst_61 [1] : vector<2x16xf32> to vector<2xf32>
    %79 = vector.shape_cast %78 : vector<2xf32> to vector<2x1xf32>
    %80 = vector.broadcast %79 : vector<2x1xf32> to vector<2x16xf32>
    %81 = arith.subf %77, %80 : vector<2x16xf32>
    %82 = math.exp %81 : vector<2x16xf32>
    %cst_62 = arith.constant dense<0.000000e+00> : vector<2xf32>
    %83 = vector.multi_reduction <add>, %82, %cst_62 [1] : vector<2x16xf32> to vector<2xf32>
    %84 = vector.shape_cast %83 : vector<2xf32> to vector<2x1xf32>
    %85 = tpu.reciprocal %84 {approx = true} : vector<2x1xf32> -> vector<2x1xf32>
    %86 = vector.broadcast %85 : vector<2x1xf32> to vector<2x16xf32>
    %87 = arith.mulf %82, %86 : vector<2x16xf32>
    %c0_63 = arith.constant 0 : index
    %c0_64 = arith.constant 0 : index
    %88 = vector.load %arg21[%c0_63, %c0_64] : memref<16x2xf32, #tpu.memory_space<vmem>>, vector<16x2xf32>
    %cst_65 = arith.constant dense<0.000000e+00> : vector<2x2xf32>
    %89 = tpu.matmul %87, %88, %cst_65 {dimension_numbers = #tpu.dot_dimension_numbers<[1], [0], [0], [1], [0, 0, 1, 1], [], []>} : vector<2x16xf32>, vector<16x2xf32>, vector<2x2xf32> -> vector<2x2xf32>
    %90 = arith.addf %89, %3 : vector<2x2xf32>
    %c0_66 = arith.constant 0 : index
    %c0_67 = arith.constant 0 : index
    %91 = vector.load %arg22[%c0_66, %c0_67] : memref<2x2xf32, #tpu.memory_space<vmem>>, vector<2x2xf32>
    tpu.vector_store %arg22[%c0_66, %c0_67], %90 {strides = array<i32>} : memref<2x2xf32, #tpu.memory_space<vmem>>, vector<2x2xf32>,
    return
  }
}

</mosaic_0001>

<bundles_post_ra>
// kernel: _lambda_.1
= control target key start
LH: loop header
LB: loop body
LE: loop exit
PB: predicated region body
PF: predicated region fallthrough
CT: control target
= control target key end

     0   :  { %s1585_s0 = inlined_call_operand.vmem [shape: f32[2,16], index: 0, kind: input, shape index: {}]   ;;  %s1586_s1 = inlined_call_operand.vmem [shape: f32[2,16], index: 1, kind: input, shape index: {}]   ;;  %s1587_s2 = inlined_call_operand.vmem [shape: f32[2,96], index: 2, kind: input, shape index: {}]   ;;  %s1588_s3 = inlined_call_operand.hbm [shape: f32[16,128], index: 3, kind: input, shape index: {}]   ;;  %s1589_s4 = inlined_call_operand.hbm [shape: f32[16,128], index: 4, kind: input, shape index: {}]   ;;  %s1590_s5 = inlined_call_operand.vmem [shape: f32[1,128], index: 5, kind: input, shape index: {}]   ;;  %s1591_s6 = inlined_call_operand.hbm [shape: f32[16,256], index: 6, kind: input, shape index: {}]   ;;  %s1592_s7 = inlined_call_operand.hbm [shape: f32[16,256], index: 7, kind: input, shape index: {}]   ;;  %s1593_s8 = inlined_call_operand.vmem [shape: f32[1,256], index: 8, kind: input, shape index: {}]   ;;  %s1594_s9 = inlined_call_operand.hbm [shape: f32[96,256], index: 9, kind: input, shape index: {}]   ;;  %s1595_s10 = inlined_call_operand.hbm [shape: f32[96,256], index: 10, kind: input, shape index: {}]   ;;  %s1596_s11 = inlined_call_operand.vmem [shape: f32[1,256], index: 11, kind: input, shape index: {}]   ;;  %s1597_s12 = inlined_call_operand.hbm [shape: f32[256,64], index: 12, kind: input, shape index: {}]   ;;  %s1598_s13 = inlined_call_operand.hbm [shape: f32[256,64], index: 13, kind: input, shape index: {}]   ;;  %s1599_s14 = inlined_call_operand.vmem [shape: f32[1,64], index: 14, kind: input, shape index: {}]   ;;  %s1600_s15 = inlined_call_operand.hbm [shape: f32[128,128], index: 15, kind: input, shape index: {}]   ;;  %s1601_s16 = inlined_call_operand.hbm [shape: f32[256,128], index: 16, kind: input, shape index: {}]   ;;  %s1602_s17 = inlined_call_operand.hbm [shape: f32[64,128], index: 17, kind: input, shape index: {}]   ;;  %s1603_s18 = inlined_call_operand.vmem [shape: f32[1,128], index: 18, kind: input, shape index: {}]   ;;  %s1604_s19 = inlined_call_operand.hbm [shape: f32[128,16], index: 19, kind: input, shape index: {}]   ;;  %s1605_s20 = inlined_call_operand.vmem [shape: f32[1,16], index: 20, kind: input, shape index: {}]   ;;  %s1606_s21 = inlined_call_operand.vmem [shape: f32[16,2], index: 21, kind: input, shape index: {}]   ;;  %s1607_s22 = inlined_call_operand.hbm [shape: f32[2,2], index: 22, kind: output, shape index: {}]  }
   0x1   :  { %1608 = sst [smem:[#allocation31_spill]] %s1585_s0 }
   0x2   :  { %1609 = sst [smem:[#allocation32_spill]] %s1586_s1 }
   0x3   :  { %1610 = sst [smem:[#allocation33_spill]] %s1587_s2 }
   0x4   :  { %1611 = sst [smem:[#allocation34_spill]] %s1588_s3 }
   0x5   :  { %1612 = sst [smem:[#allocation35_spill]] %s1589_s4 }
   0x6   :  { %1613 = sst [smem:[#allocation36_spill]] %s1590_s5 }
   0x7   :  { %1614 = sst [smem:[#allocation37_spill]] %s1591_s6 }
   0x8   :  { %27 = vsyncpa [#allocation3], 0 }
   0x9   :  { %28 = vsyncpa [#allocation6], 0 }
   0xa   :  { %29 = vsyncpa [#allocation9], 0 }
   0xb   :  { %30 = vsyncpa [#allocation12], 0 }
   0xc   :  { %31 = vsyncpa [#allocation15], 0 }
   0xd   :  { %32 = vsyncpa [#allocation18], 0 }
   0xe   :  { %33 = vsyncpa [#allocation21], 0 }
   0xf   :  { %34 = vsyncpa [#allocation4], 0  ;;  %s1615_s29 = sld [smem:[#allocation35_spill]]  ;;  %s1329_s4 = smov [#allocation5]  }
  0x10   :  { %s60_s0 = sshll.u32 %s1329_s4, 4  ;;  %s1330_s23 = smov 128   ;;  %s61_s0 = int_to_ptr.vmem [resolvable:$true] %s60_s0 }
  0x11   :  { %s1331_s1 = smov 8   ;;  %s86_s6 = sshll.u32 %s1592_s7, 4  ;;  %s87_s6 = int_to_ptr.hbm [resolvable:$true] %s86_s6 }
  0x12   :  { %s1332_s25 = smov [#allocation8]   ;;  %s114_s3 = sshll.u32 %s1595_s10, 4  ;;  %s115_s3 = int_to_ptr.hbm [resolvable:$true] %s114_s3 }
  0x13   :  { %s88_s26 = sshll.u32 %s1332_s25, 4  ;;  %s1333_s28 = smov 256   ;;  %s89_s26 = int_to_ptr.vmem [resolvable:$true] %s88_s26 }
  0x14   :  { %s1335_s7 = smov [#allocation11]   ;;  %s1336_s10 = smov [#allocation14]  }
  0x15   :  { %s58_s30 = sshll.u32 %s1615_s29, 4  ;;  %s1334_s29 = smov 16   ;;  %s59_s30 = int_to_ptr.hbm [resolvable:$true] %s58_s30 }
  0x16   :  { %66 = dma.hbm_to_vmem [thread:$0]  %s59_s30, 256, %s61_s0, [#allocation6], %s1330_s23, %s1330_s23, %s1331_s1  }
  0x17   :  { %94 = dma.hbm_to_vmem [thread:$0]  %s87_s6, 512, %s89_s26, [#allocation9], %s1333_s28, %s1333_s28, %s1334_s29  }
  0x18   :  { %s142_s0 = sshll.u32 %s1598_s13, 4  ;;  %s116_s5 = sshll.u32 %s1335_s7, 4  ;;  %s143_s0 = int_to_ptr.hbm [resolvable:$true] %s142_s0  ;;  %s117_s5 = int_to_ptr.vmem [resolvable:$true] %s116_s5 }
  0x19   :  { %122 = dma.hbm_to_vmem [thread:$0]  %s115_s3, 3072, %s117_s5, [#allocation12], %s1333_s28, %s1333_s28, %s1334_s29  }
  0x1a   :  { %s144_s24 = sshll.u32 %s1336_s10, 4  ;;  %s170_s27 = sshll.u32 %s1601_s16, 4  ;;  %s145_s24 = int_to_ptr.vmem [resolvable:$true] %s144_s24  ;;  %s171_s27 = int_to_ptr.hbm [resolvable:$true] %s170_s27 }
  0x1b   :  { %150 = dma.hbm_to_vmem [thread:$0]  %s143_s0, 4096, %s145_s24, [#allocation15], %s1330_s23, %s1330_s23, %s1331_s1  }
  0x1c   :  { %s1616_s26 = sld [smem:[#allocation34_spill]]  ;;  %s1337_s4 = smov [#allocation17]  }
  0x1d   :  { %s172_s7 = sshll.u32 %s1337_s4, 4  ;;  %s1338_s3 = smov [#allocation2]   ;;  %s173_s7 = int_to_ptr.vmem [resolvable:$true] %s172_s7 }
  0x1e   :  { %178 = dma.hbm_to_vmem [thread:$0]  %s171_s27, 4096, %s173_s7, [#allocation18], %s1330_s23, %s1330_s23, %s1331_s1  }
  0x1f   :  { %s47_s16 = sshll.u32 %s1338_s3, 4  ;;  %s1617_s25 = sld [smem:[#allocation37_spill]]  ;;  %s48_s16 = int_to_ptr.vmem [resolvable:$true] %s47_s16 }
  0x20   :  { %s101_s13 = sshll.u32 %s1594_s9, 4  ;;  %s1339_s6 = smov [#allocation7]   ;;  %s102_s13 = int_to_ptr.hbm [resolvable:$true] %s101_s13 }
  0x21   :  { %s1340_s27 = smov [#allocation10]   ;;  %s129_s5 = sshll.u32 %s1597_s12, 4  ;;  %s130_s5 = int_to_ptr.hbm [resolvable:$true] %s129_s5 }
  0x22   :  { %s45_s30 = sshll.u32 %s1616_s26, 4  ;;  %s75_s26 = sshll.u32 %s1339_s6, 4  ;;  %s46_s30 = int_to_ptr.hbm [resolvable:$true] %s45_s30  ;;  %s76_s26 = int_to_ptr.vmem [resolvable:$true] %s75_s26 }
  0x23   :  { %53 = dma.hbm_to_vmem [thread:$0]  %s46_s30, 256, %s48_s16, [#allocation3], %s1330_s23, %s1330_s23, %s1331_s1  }
  0x24   :  { %s103_s4 = sshll.u32 %s1340_s27, 4  ;;  %s157_s16 = sshll.u32 %s1600_s15, 4  ;;  %s104_s4 = int_to_ptr.vmem [resolvable:$true] %s103_s4  ;;  %s158_s16 = int_to_ptr.hbm [resolvable:$true] %s157_s16 }
  0x25   :  { %s73_s2 = sshll.u32 %s1617_s25, 4  ;;  %s1341_s10 = smov [#allocation13]   ;;  %s74_s2 = int_to_ptr.hbm [resolvable:$true] %s73_s2 }
  0x26   :  { %81 = dma.hbm_to_vmem [thread:$0]  %s74_s2, 512, %s76_s26, [#allocation6], %s1333_s28, %s1333_s28, %s1334_s29  }
  0x27   :  { %109 = dma.hbm_to_vmem [thread:$0]  %s102_s13, 3072, %s104_s4, [#allocation9], %s1333_s28, %s1333_s28, %s1334_s29  }
  0x28   :  { %s131_s25 = sshll.u32 %s1341_s10, 4  ;;  %s1342_s2 = smov [#allocation16]   ;;  %s132_s25 = int_to_ptr.vmem [resolvable:$true] %s131_s25 }
  0x29   :  { %137 = dma.hbm_to_vmem [thread:$0]  %s130_s5, 4096, %s132_s25, [#allocation12], %s1330_s23, %s1330_s23, %s1331_s1  }
  0x2a   :  { %s159_s12 = sshll.u32 %s1342_s2, 4  ;;  %s183_s6 = sshll.u32 %s1602_s17, 4  ;;  %s160_s12 = int_to_ptr.vmem [resolvable:$true] %s159_s12  ;;  %s184_s6 = int_to_ptr.hbm [resolvable:$true] %s183_s6 }
  0x2b   :  { %165 = dma.hbm_to_vmem [thread:$0]  %s158_s16, 2048, %s160_s12, [#allocation15], %s1330_s23, %s1330_s23, %s1331_s1  }
  0x2c   :  { %s198_s29 = sshll.u32 %s1604_s19, 4  ;;  %s1343_s13 = smov [#allocation19]   ;;  %s199_s29 = int_to_ptr.hbm [resolvable:$true] %s198_s29 }
  0x2d   :  { %s185_s26 = sshll.u32 %s1343_s13, 4  ;;  %s1344_s27 = smov [#allocation20]   ;;  %s186_s26 = int_to_ptr.vmem [resolvable:$true] %s185_s26 }
  0x2e   :  { %191 = dma.hbm_to_vmem [thread:$0]  %s184_s6, 1024, %s186_s26, [#allocation18], %s1330_s23, %s1330_s23, %s1331_s1  }
  0x2f   :  { %s200_s17 = sshll.u32 %s1344_s27, 4  ;;  %s201_s17 = int_to_ptr.vmem [resolvable:$true] %s200_s17 }
  0x30   :  { %206 = dma.hbm_to_vmem [thread:$0]  %s199_s29, 2048, %s201_s17, [#allocation21], %s1330_s23, %s1330_s23, %s1331_s1  }
  0x31   :  { %1313 = dma.done.wait [#allocation3], 256  }
  0x32   :  { %1314 = vsyncadd [#allocation3], 4294967040 }
  0x33   :  { %1315 = dma.done.wait [#allocation6], 768  }
  0x34   :  { %1316 = vsyncadd [#allocation6], 4294966528 }
  0x35   :  { %1317 = dma.done.wait [#allocation9], 3584  }
  0x36   :  { %1318 = vsyncadd [#allocation9], 4294963712 }
  0x37   :  { %1319 = dma.done.wait [#allocation12], 7168  }
  0x38   :  { %1320 = vsyncadd [#allocation12], 4294960128 }
  0x39   :  { %1321 = dma.done.wait [#allocation15], 6144  }
  0x3a   :  { %1322 = vsyncadd [#allocation15], 4294961152 }
  0x3b   :  { %1323 = dma.done.wait [#allocation18], 5120  }
  0x3c   :  { %1324 = vsyncadd [#allocation18], 4294962176 }
  0x3d   :  { %1325 = dma.done.wait [#allocation21], 2048  }
  0x3e   :  { %1326 = vsyncadd [#allocation21], 4294965248  ;;  %v265_v0 = vld [vmem:[#allocation5 + $0x8] sm:$0xff]  ;;  %v319_v1 = vld [vmem:[#allocation7 + $0x10] sm:$0xff]  ;;  %s1618_s1 = sld [smem:[#allocation31_spill]]  ;;  %vm270_vm0 = vcmask 130048  }
  0x3f   :  { %v264_v2 = vld [vmem:[#allocation5] sm:$0xff]  ;;  %309 = vmatpush.msra.mxu3 %v265_v0  ;;  %348 = vmatpush.msra.mxu2 %v319_v1  ;;  %v317_v3 = vld [vmem:[#allocation7] sm:$0xff]  ;;  %v263_v4 = vld [vmem:[#allocation2 + $0x8] sm:$0xff]  ;;  %s1619_s3 = sld [smem:[#allocation32_spill]]  ;;  %vm474_vm1 = vcmask 785408   ;;  %vm831_vm2 = vcmask 523264  }
  0x40   :  { %v320_v5 = vld [vmem:[#allocation7 + $0x18] sm:$0xff]  ;;  %288 = vmatpush.msra.mxu0 %v263_v4  ;;  %v442_v6 = vld [vmem:[#allocation10 + $0xb0] sm:$0xff]  ;;  %v262_v8 = vld [vmem:[#allocation2] sm:$0xff]  ;;  %s1620_s30 = sld [smem:[#allocation33_spill]]  ;;  %vm902_vm3 = vcmask 123904   ;;  %s948_s23 = sshll.u32 %s1607_s22, 4  ;;  %s949_s23 = int_to_ptr.hbm [resolvable:$true] %s948_s23 }
  0x41   :  { %310 = vmatpush.msra.mxu3 %v264_v2  ;;  %349 = vmatpush.msra.mxu2 %v317_v3  ;;  %v318_v9 = vld [vmem:[#allocation7 + $0x8] sm:$0xff]  ;;  %v440_v10 = vld [vmem:[#allocation10 + $0xa0] sm:$0xff]  ;;  %v323_v11 = vld [vmem:[#allocation8 + $0x10] sm:$0xff]  ;;  %s1621_s24 = sld [smem:[#allocation36_spill]]  ;;  %vm939_vm4 = vcmask 9216  }
  0x42   :  { %v443_v12 = vld [vmem:[#allocation10 + $0xb8] sm:$0xff]  ;;  %289 = vmatpush.msra.mxu0 %v262_v8  ;;  %v438_v13 = vld [vmem:[#allocation10 + $0x90] sm:$0xff]  ;;  %v321_v14 = vld [vmem:[#allocation8] sm:$0xff] }
  0x43   :  { %368 = vmatpush.msrb.mxu3 %v320_v5  ;;  %482 = vmatpush.msrb.mxu2 %v442_v6  ;;  %v441_v15 = vld [vmem:[#allocation10 + $0xa8] sm:$0xff]  ;;  %v324_v16 = vld [vmem:[#allocation8 + $0x18] sm:$0xff]  ;;  %v436_v17 = vld [vmem:[#allocation10 + $0x80] sm:$0xff] }
  0x44   :  { %v1536_v7 = vld [vmem:[%s1618_s1] sm:$0x3]  ;;  %390 = vmatpush.msrb.mxu0 %v323_v11  ;;  %v466_v18 = vld [vmem:[#allocation11 + $0xb0] sm:$0xff]  ;;  %v439_v19 = vld [vmem:[#allocation10 + $0x98] sm:$0xff]  ;;  %410 = vmatpush.msra.mxu1 %v324_v16 }
  0x45   :  { %965 = vmatmul.msk.f32.vlgmr.msra.gmra.mxu3 %vm270_vm0, %v1536_v7  ;;  %483 = vmatpush.msrb.mxu2 %v440_v10  ;;  %v322_v20 = vld [vmem:[#allocation8 + $0x8] sm:$0xff]  ;;  %v434_v21 = vld [vmem:[#allocation10 + $0x70] sm:$0xff]  ;;  %v464_v22 = vld [vmem:[#allocation11 + $0xa0] sm:$0xff] }
  0x46   :  { %369 = vmatpush.msrb.mxu3 %v318_v9  ;;  %964 = vmatmul.msk.f32.vlgmr.msra.gmra.mxu0 %vm270_vm0, %v1536_v7  ;;  %v437_v23 = vld [vmem:[#allocation10 + $0x88] sm:$0xff]  ;;  %v467_v24 = vld [vmem:[#allocation11 + $0xb8] sm:$0xff]  ;;  %v432_v25 = vld [vmem:[#allocation10 + $0x60] sm:$0xff] }
  0x47   :  { %484 = vmatpush.msrb.mxu2 %v438_v13  ;;  %391 = vmatpush.msrb.mxu0 %v321_v14  ;;  %v462_v26 = vld [vmem:[#allocation11 + $0x90] sm:$0xff]  ;;  %v435_v27 = vld [vmem:[#allocation10 + $0x78] sm:$0xff]  ;;  %v465_v28 = vld [vmem:[#allocation11 + $0xa8] sm:$0xff] }
  0x48   :  { %502 = vmatpush.msra.mxu3 %v443_v12  ;;  %411 = vmatpush.msra.mxu1 %v322_v20  ;;  %v430_v29 = vld [vmem:[#allocation10 + $0x50] sm:$0xff]  ;;  %v460_v30 = vld [vmem:[#allocation11 + $0x80] sm:$0xff]  ;;  %v433_v31 = vld [vmem:[#allocation10 + $0x68] sm:$0xff] }
  0x49   :  { %485 = vmatpush.msrb.mxu2 %v436_v17  ;;  %524 = vmatpush.msra.mxu0 %v466_v18  ;;  %v463_v32 = vld [vmem:[#allocation11 + $0x98] sm:$0xff]  ;;  %v428_v33 = vld [vmem:[#allocation10 + $0x40] sm:$0xff]  ;;  %v458_v34 = vld [vmem:[#allocation11 + $0x70] sm:$0xff] }
  0x4a   :  { %503 = vmatpush.msra.mxu3 %v441_v15  ;;  %544 = vmatpush.msrb.mxu1 %v467_v24  ;;  %v260_v35 = vld [vmem:[%s1619_s3] sm:$0x3]  ;;  %v431_v36 = vld [vmem:[#allocation10 + $0x58] sm:$0xff]  ;;  %v461_v37 = vld [vmem:[#allocation11 + $0x88] sm:$0xff] }
  0x4b   :  { %486 = vmatpush.msrb.mxu2 %v434_v21  ;;  %525 = vmatpush.msra.mxu0 %v464_v22  ;;  %v426_v38 = vld [vmem:[#allocation10 + $0x30] sm:$0xff]  ;;  %v456_v39 = vld [vmem:[#allocation11 + $0x60] sm:$0xff]  ;;  %v429_v40 = vld [vmem:[#allocation10 + $0x48] sm:$0xff] }
  0x4c   :  { %504 = vmatpush.msra.mxu3 %v439_v19  ;;  %545 = vmatpush.msrb.mxu1 %v465_v28  ;;  %v459_v41 = vld [vmem:[#allocation11 + $0x78] sm:$0xff]  ;;  %v424_v42 = vld [vmem:[#allocation10 + $0x20] sm:$0xff]  ;;  %v454_v43 = vld [vmem:[#allocation11 + $0x50] sm:$0xff] }
  0x4d   :  { %487 = vmatpush.msrb.mxu2 %v432_v25  ;;  %526 = vmatpush.msra.mxu0 %v462_v26  ;;  %v427_v44 = vld [vmem:[#allocation10 + $0x38] sm:$0xff]  ;;  %v457_v45 = vld [vmem:[#allocation11 + $0x68] sm:$0xff]  ;;  %v422_v46 = vld [vmem:[#allocation10 + $0x10] sm:$0xff] }
  0x4e   :  { %505 = vmatpush.msra.mxu3 %v437_v23  ;;  %546 = vmatpush.msrb.mxu1 %v463_v32  ;;  %v452_v47 = vld [vmem:[#allocation11 + $0x40] sm:$0xff]  ;;  %v425_v48 = vld [vmem:[#allocation10 + $0x28] sm:$0xff]  ;;  %v455_v49 = vld [vmem:[#allocation11 + $0x58] sm:$0xff] }
  0x4f   :  { %488 = vmatpush.msrb.mxu2 %v430_v29  ;;  %527 = vmatpush.msra.mxu0 %v460_v30  ;;  %v420_v50 = vld [vmem:[#allocation10] sm:$0xff]  ;;  %v450_v51 = vld [vmem:[#allocation11 + $0x30] sm:$0xff]  ;;  %v423_v53 = vld [vmem:[#allocation10 + $0x18] sm:$0xff] }
  0x50   :  { %506 = vmatpush.msra.mxu3 %v435_v27  ;;  %966 = vmatmul.msk.f32.vlgmr.msra.gmra.mxu2 %vm270_vm0, %v260_v35  ;;  %v261_v52 = vld [vmem:[%s1620_s30] sm:$0x3]  ;;  %v453_v54 = vld [vmem:[#allocation11 + $0x48] sm:$0xff]  ;;  %v451_v57 = vld [vmem:[#allocation11 + $0x38] sm:$0xff] }
  0x51   :  { %489 = vmatpush.msrb.mxu2 %v428_v33  ;;  %528 = vmatpush.msra.mxu0 %v458_v34  ;;  %v448_v55 = vld [vmem:[#allocation11 + $0x20] sm:$0xff]  ;;  %v421_v56 = vld [vmem:[#allocation10 + $0x8] sm:$0xff]  ;;  %v446_v58 = vld [vmem:[#allocation11 + $0x10] sm:$0xff] }
  0x52   :  { %507 = vmatpush.msra.mxu3 %v433_v31  ;;  %547 = vmatpush.msrb.mxu1 %v461_v37  ;;  %v579_v59 = vld [vmem:[#allocation13 + $0x78] sm:$0xff]  ;;  %v449_v60 = vld [vmem:[#allocation11 + $0x28] sm:$0xff]  ;;  %v444_v62 = vld [vmem:[#allocation11] sm:$0xff] }
  0x53   :  { %490 = vmatpush.msrb.mxu2 %v426_v38  ;;  %529 = vmatpush.msra.mxu0 %v456_v39  ;;  %v595_v61 = vld [vmem:[#allocation13 + $0xf8] sm:$0xff]  ;;  %v578_v0 = vld [vmem:[#allocation13 + $0x70] sm:$0xff]  ;;  %v577_v2 = vld [vmem:[#allocation13 + $0x68] sm:$0xff] }
  0x54   :  { %508 = vmatpush.msra.mxu3 %v431_v36  ;;  %548 = vmatpush.msrb.mxu1 %v459_v41  ;;  %v447_v63 = vld [vmem:[#allocation11 + $0x18] sm:$0xff]  ;;  %v445_v3 = vld [vmem:[#allocation11 + $0x8] sm:$0xff]  ;;  %v594_v4 = vld [vmem:[#allocation13 + $0xf0] sm:$0xff] }
  0x55   :  { %967 = vmatmul.msk.f32.vlgmr.msrb.gmra.mxu3 %vm270_vm0, %v260_v35  ;;  %491 = vmatpush.msrb.mxu2 %v424_v42  ;;  %v611_v1 = vld [vmem:[#allocation14 + $0x78] sm:$0xff]  ;;  %v610_v5 = vld [vmem:[#allocation14 + $0x70] sm:$0xff]  ;;  %v576_v6 = vld [vmem:[#allocation13 + $0x60] sm:$0xff] }
  0x56   :  { %509 = vmatpush.msra.mxu3 %v429_v40  ;;  %530 = vmatpush.msra.mxu0 %v454_v43  ;;  %v593_v8 = vld [vmem:[#allocation13 + $0xe8] sm:$0xff]  ;;  %v575_v10 = vld [vmem:[#allocation13 + $0x58] sm:$0xff]  ;;  %v592_v11 = vld [vmem:[#allocation13 + $0xe0] sm:$0xff] }
  0x57   :  { %549 = vmatpush.msrb.mxu1 %v457_v45  ;;  %492 = vmatpush.msrb.mxu2 %v422_v46  ;;  %v609_v9 = vld [vmem:[#allocation14 + $0x68] sm:$0xff]  ;;  %v608_v12 = vld [vmem:[#allocation14 + $0x60] sm:$0xff]  ;;  %v574_v13 = vld [vmem:[#allocation13 + $0x50] sm:$0xff] }
  0x58   :  { %510 = vmatpush.msra.mxu3 %v427_v44  ;;  %531 = vmatpush.msra.mxu0 %v452_v47  ;;  %v591_v14 = vld [vmem:[#allocation13 + $0xd8] sm:$0xff]  ;;  %v573_v16 = vld [vmem:[#allocation13 + $0x48] sm:$0xff]  ;;  %v590_v17 = vld [vmem:[#allocation13 + $0xd0] sm:$0xff] }
  0x59   :  { %968 = vmatmul.msk.f32.vlgmr.msrb.gmra.mxu0 %vm270_vm0, %v260_v35  ;;  %550 = vmatpush.msrb.mxu1 %v455_v49  ;;  %v607_v15 = vld [vmem:[#allocation14 + $0x58] sm:$0xff]  ;;  %v606_v18 = vld [vmem:[#allocation14 + $0x50] sm:$0xff]  ;;  %v572_v19 = vld [vmem:[#allocation13 + $0x40] sm:$0xff] }
  0x5a   :  { %511 = vmatpush.msra.mxu3 %v425_v48  ;;  %493 = vmatpush.msrb.mxu2 %v420_v50  ;;  %v589_v20 = vld [vmem:[#allocation13 + $0xc8] sm:$0xff]  ;;  %v571_v22 = vld [vmem:[#allocation13 + $0x38] sm:$0xff]  ;;  %v588_v23 = vld [vmem:[#allocation13 + $0xc0] sm:$0xff] }
  0x5b   :  { %532 = vmatpush.msra.mxu0 %v450_v51  ;;  %970 = vmatmul.msk.f32.vlgmr.msrb.gmra.mxu2 %vm474_vm1, %v261_v52  ;;  %v605_v21 = vld [vmem:[#allocation14 + $0x48] sm:$0xff]  ;;  %v604_v24 = vld [vmem:[#allocation14 + $0x40] sm:$0xff]  ;;  %v570_v25 = vld [vmem:[#allocation13 + $0x30] sm:$0xff] }
  0x5c   :  { %512 = vmatpush.msra.mxu3 %v423_v53  ;;  %551 = vmatpush.msrb.mxu1 %v453_v54  ;;  %v587_v26 = vld [vmem:[#allocation13 + $0xb8] sm:$0xff]  ;;  %v569_v28 = vld [vmem:[#allocation13 + $0x28] sm:$0xff]  ;;  %v586_v29 = vld [vmem:[#allocation13 + $0xb0] sm:$0xff] }
  0x5d   :  { %533 = vmatpush.msra.mxu0 %v448_v55  ;;  %969 = vmatmul.msk.f32.vlgmr.msra.gmra.mxu1 %vm270_vm0, %v260_v35  ;;  %v603_v27 = vld [vmem:[#allocation14 + $0x38] sm:$0xff]  ;;  %v602_v30 = vld [vmem:[#allocation14 + $0x30] sm:$0xff]  ;;  %v568_v31 = vld [vmem:[#allocation13 + $0x20] sm:$0xff] }
  0x5e   :  { %513 = vmatpush.msra.mxu3 %v421_v56  ;;  %552 = vmatpush.msrb.mxu1 %v451_v57  ;;  %v585_v32 = vld [vmem:[#allocation13 + $0xa8] sm:$0xff]  ;;  %v567_v34 = vld [vmem:[#allocation13 + $0x18] sm:$0xff]  ;;  %v600_v35 = vld [vmem:[#allocation14 + $0x20] sm:$0xff] }
  0x5f   :  { %971 = vmatmul.msk.f32.vlgmr.msra.gmra.mxu3 %vm474_vm1, %v261_v52  ;;  %534 = vmatpush.msra.mxu0 %v446_v58  ;;  %v601_v33 = vld [vmem:[#allocation14 + $0x28] sm:$0xff]  ;;  %v599_v36 = vld [vmem:[#allocation14 + $0x18] sm:$0xff]  ;;  %v584_v37 = vld [vmem:[#allocation13 + $0xa0] sm:$0xff] }
  0x60   :  { %632 = vmatpush.msra.mxu2 %v579_v59  ;;  %553 = vmatpush.msrb.mxu1 %v449_v60  ;;  %v566_v38 = vld [vmem:[#allocation13 + $0x10] sm:$0xff]  ;;  %v627_v40 = vld [vmem:[#allocation14 + $0xf8] sm:$0xff]  ;;  %v565_v42 = vld [vmem:[#allocation13 + $0x8] sm:$0xff] }
  0x61   :  { %652 = vmatpush.msrb.mxu3 %v595_v61  ;;  %535 = vmatpush.msra.mxu0 %v444_v62  ;;  %v598_v39 = vld [vmem:[#allocation14 + $0x10] sm:$0xff]  ;;  %v583_v41 = vld [vmem:[#allocation13 + $0x98] sm:$0xff]  ;;  %v597_v43 = vld [vmem:[#allocation14 + $0x8] sm:$0xff] }
  0x62   :  { %633 = vmatpush.msra.mxu2 %v578_v0  ;;  %972 = vmatmul.msk.f32.vlgmr.msra.gmra.mxu0 %vm474_vm1, %v261_v52  ;;  %v626_v44 = vld [vmem:[#allocation14 + $0xf0] sm:$0xff]  ;;  %v564_v46 = vld [vmem:[#allocation13] sm:$0xff]  ;;  %v625_v48 = vld [vmem:[#allocation14 + $0xe8] sm:$0xff] }
  0x63   :  { %554 = vmatpush.msrb.mxu1 %v447_v63  ;;  %673 = vmatpush.msrb.mxu0 %v611_v1  ;;  %v582_v45 = vld [vmem:[#allocation13 + $0x90] sm:$0xff]  ;;  %v596_v47 = vld [vmem:[#allocation14] sm:$0xff]  ;;  %v581_v49 = vld [vmem:[#allocation13 + $0x88] sm:$0xff] }
  0x64   :  { %634 = vmatpush.msra.mxu2 %v577_v2  ;;  %653 = vmatpush.msrb.mxu3 %v594_v4  ;;  %v746_v50 = vld [vmem:[#allocation17 + $0x78] sm:$0xff]  ;;  %v580_v53 = vld [vmem:[#allocation13 + $0x80] sm:$0xff]  ;;  %v745_v54 = vld [vmem:[#allocation17 + $0x70] sm:$0xff] }
  0x65   :  { %555 = vmatpush.msrb.mxu1 %v445_v3  ;;  %674 = vmatpush.msrb.mxu0 %v610_v5  ;;  %v730_v51 = vld [vmem:[#allocation16 + $0x78] sm:$0xff]  ;;  %v729_v55 = vld [vmem:[#allocation16 + $0x70] sm:$0xff]  ;;  %v744_v58 = vld [vmem:[#allocation17 + $0x68] sm:$0xff] }
  0x66   :  { %973 = vmatmul.msk.f32.vlgmr.msrb.gmra.mxu1 %vm474_vm1, %v261_v52  ;;  %635 = vmatpush.msra.mxu2 %v576_v6  ;;  %v624_v52 = vld [vmem:[#allocation14 + $0xe0] sm:$0xff]  ;;  %v623_v56 = vld [vmem:[#allocation14 + $0xd8] sm:$0xff]  ;;  %v728_v59 = vld [vmem:[#allocation16 + $0x68] sm:$0xff] }
  0x67   :  { %654 = vmatpush.msrb.mxu3 %v593_v8  ;;  %675 = vmatpush.msrb.mxu0 %v609_v9  ;;  %v762_v57 = vld [vmem:[#allocation17 + $0xf8] sm:$0xff]  ;;  %v622_v60 = vld [vmem:[#allocation14 + $0xd0] sm:$0xff]  ;;  %v743_v62 = vld [vmem:[#allocation17 + $0x60] sm:$0xff] }
  0x68   :  { %636 = vmatpush.msra.mxu2 %v575_v10  ;;  %693 = vmatpush.msra.mxu1 %v627_v40  ;;  %v761_v61 = vld [vmem:[#allocation17 + $0xf0] sm:$0xff]  ;;  %v727_v63 = vld [vmem:[#allocation16 + $0x60] sm:$0xff]  ;;  %v621_v0 = vld [vmem:[#allocation14 + $0xc8] sm:$0xff] }
  0x69   :  { %655 = vmatpush.msrb.mxu3 %v592_v11  ;;  %676 = vmatpush.msrb.mxu0 %v608_v12  ;;  %v760_v1 = vld [vmem:[#allocation17 + $0xe8] sm:$0xff]  ;;  %v742_v2 = vld [vmem:[#allocation17 + $0x58] sm:$0xff]  ;;  %v620_v4 = vld [vmem:[#allocation14 + $0xc0] sm:$0xff] }
  0x6a   :  { %637 = vmatpush.msra.mxu2 %v574_v13  ;;  %694 = vmatpush.msra.mxu1 %v626_v44  ;;  %v726_v3 = vld [vmem:[#allocation16 + $0x58] sm:$0xff]  ;;  %v759_v5 = vld [vmem:[#allocation17 + $0xe0] sm:$0xff]  ;;  %v741_v6 = vld [vmem:[#allocation17 + $0x50] sm:$0xff] }
  0x6b   :  { %656 = vmatpush.msrb.mxu3 %v591_v14  ;;  %677 = vmatpush.msrb.mxu0 %v607_v15  ;;  %v725_v8 = vld [vmem:[#allocation16 + $0x50] sm:$0xff]  ;;  %v619_v9 = vld [vmem:[#allocation14 + $0xb8] sm:$0xff]  ;;  %v740_v11 = vld [vmem:[#allocation17 + $0x48] sm:$0xff] }
  0x6c   :  { %638 = vmatpush.msra.mxu2 %v573_v16  ;;  %695 = vmatpush.msra.mxu1 %v625_v48  ;;  %v758_v10 = vld [vmem:[#allocation17 + $0xd8] sm:$0xff]  ;;  %v724_v12 = vld [vmem:[#allocation16 + $0x48] sm:$0xff]  ;;  %v618_v13 = vld [vmem:[#allocation14 + $0xb0] sm:$0xff] }
  0x6d   :  { %657 = vmatpush.msrb.mxu3 %v590_v17  ;;  %678 = vmatpush.msrb.mxu0 %v606_v18  ;;  %v757_v14 = vld [vmem:[#allocation17 + $0xd0] sm:$0xff]  ;;  %v739_v15 = vld [vmem:[#allocation17 + $0x40] sm:$0xff]  ;;  %v617_v17 = vld [vmem:[#allocation14 + $0xa8] sm:$0xff] }
  0x6e   :  { %639 = vmatpush.msra.mxu2 %v572_v19  ;;  %696 = vmatpush.msra.mxu1 %v624_v52  ;;  %v723_v16 = vld [vmem:[#allocation16 + $0x40] sm:$0xff]  ;;  %v756_v18 = vld [vmem:[#allocation17 + $0xc8] sm:$0xff]  ;;  %v738_v19 = vld [vmem:[#allocation17 + $0x38] sm:$0xff] }
  0x6f   :  { %658 = vmatpush.msrb.mxu3 %v589_v20  ;;  %679 = vmatpush.msrb.mxu0 %v605_v21  ;;  %v722_v20 = vld [vmem:[#allocation16 + $0x38] sm:$0xff]  ;;  %v616_v21 = vld [vmem:[#allocation14 + $0xa0] sm:$0xff]  ;;  %v717_v40 = vld [vmem:[#allocation16 + $0x10] sm:$0xff] }
  0x70   :  { %640 = vmatpush.msra.mxu2 %v571_v22  ;;  %697 = vmatpush.msra.mxu1 %v623_v56  ;;  %v755_v22 = vld [vmem:[#allocation17 + $0xc0] sm:$0xff]  ;;  %v749_v44 = vld [vmem:[#allocation17 + $0x90] sm:$0xff] }
  0x71   :  { %659 = vmatpush.msrb.mxu3 %v588_v23  ;;  %680 = vmatpush.msrb.mxu0 %v604_v24  ;;  %v737_v23 = vld [vmem:[#allocation17 + $0x30] sm:$0xff] }
  0x72   :  { %641 = vmatpush.msra.mxu2 %v570_v25  ;;  %698 = vmatpush.msra.mxu1 %v622_v60  ;;  %v721_v24 = vld [vmem:[#allocation16 + $0x30] sm:$0xff]  ;;  %v615_v25 = vld [vmem:[#allocation14 + $0x98] sm:$0xff]  ;;  %v993_v60 = vld [vmem:[%s1621_s24] ss:$0 sm:$0xff] }
  0x73   :  { %660 = vmatpush.msrb.mxu3 %v587_v26  ;;  %681 = vmatpush.msrb.mxu0 %v603_v27  ;;  %v754_v26 = vld [vmem:[#allocation17 + $0xb8] sm:$0xff]  ;;  %v736_v27 = vld [vmem:[#allocation17 + $0x28] sm:$0xff] }
  0x74   :  { %642 = vmatpush.msra.mxu2 %v569_v28  ;;  %699 = vmatpush.msra.mxu1 %v621_v0  ;;  %v720_v28 = vld [vmem:[#allocation16 + $0x28] sm:$0xff] }
  0x75   :  { %661 = vmatpush.msrb.mxu3 %v586_v29  ;;  %682 = vmatpush.msrb.mxu0 %v602_v30  ;;  %v614_v29 = vld [vmem:[#allocation14 + $0x90] sm:$0xff] }
  0x76   :  { %643 = vmatpush.msra.mxu2 %v568_v31  ;;  %700 = vmatpush.msra.mxu1 %v620_v4  ;;  %v753_v30 = vld [vmem:[#allocation17 + $0xb0] sm:$0xff]  ;;  %v735_v31 = vld [vmem:[#allocation17 + $0x20] sm:$0xff] }
  0x77   :  { %662 = vmatpush.msrb.mxu3 %v585_v32  ;;  %683 = vmatpush.msrb.mxu0 %v601_v33  ;;  %v719_v32 = vld [vmem:[#allocation16 + $0x20] sm:$0xff]  ;;  %v613_v33 = vld [vmem:[#allocation14 + $0x88] sm:$0xff] }
  0x78   :  { %644 = vmatpush.msra.mxu2 %v567_v34  ;;  %701 = vmatpush.msra.mxu1 %v619_v9  ;;  %v752_v34 = vld [vmem:[#allocation17 + $0xa8] sm:$0xff] }
  0x79   :  { %684 = vmatpush.msrb.mxu0 %v600_v35  ;;  %663 = vmatpush.msrb.mxu3 %v584_v37  ;;  %v734_v35 = vld [vmem:[#allocation17 + $0x18] sm:$0xff]  ;;  %v612_v37 = vld [vmem:[#allocation14 + $0x80] sm:$0xff] }
  0x7a   :  { %645 = vmatpush.msra.mxu2 %v566_v38  ;;  %702 = vmatpush.msra.mxu1 %v618_v13  ;;  %v751_v38 = vld [vmem:[#allocation17 + $0xa0] sm:$0xff] }
  0x7b   :  { %685 = vmatpush.msrb.mxu0 %v599_v36  ;;  %664 = vmatpush.msrb.mxu3 %v583_v41  ;;  %v718_v36 = vld [vmem:[#allocation16 + $0x18] sm:$0xff] }
  0x7c   :  { %646 = vmatpush.msra.mxu2 %v565_v42  ;;  %703 = vmatpush.msra.mxu1 %v617_v17  ;;  %v750_v41 = vld [vmem:[#allocation17 + $0x98] sm:$0xff]  ;;  %v732_v42 = vld [vmem:[#allocation17 + $0x8] sm:$0xff] }
  0x7d   :  { %686 = vmatpush.msrb.mxu0 %v598_v39  ;;  %665 = vmatpush.msrb.mxu3 %v582_v45  ;;  %v733_v39 = vld [vmem:[#allocation17 + $0x10] sm:$0xff]  ;;  %v731_v45 = vld [vmem:[#allocation17] sm:$0xff] }
  0x7e   :  { %647 = vmatpush.msra.mxu2 %v564_v46  ;;  %704 = vmatpush.msra.mxu1 %v616_v21  ;;  %v715_v46 = vld [vmem:[#allocation16] sm:$0xff] }
  0x7f   :  { %687 = vmatpush.msrb.mxu0 %v597_v43  ;;  %666 = vmatpush.msrb.mxu3 %v581_v49  ;;  %v716_v43 = vld [vmem:[#allocation16 + $0x8] sm:$0xff]  ;;  %v747_v49 = vld [vmem:[#allocation17 + $0x80] sm:$0xff] }
  0x80   :  { %763 = vmatpush.msrb.mxu2 %v746_v50  ;;  %705 = vmatpush.msra.mxu1 %v615_v25 }
  0x81   :  { %688 = vmatpush.msrb.mxu0 %v596_v47  ;;  %667 = vmatpush.msrb.mxu3 %v580_v53  ;;  %v748_v47 = vld [vmem:[#allocation17 + $0x88] sm:$0xff] }
  0x82   :  { %764 = vmatpush.msrb.mxu2 %v745_v54  ;;  %706 = vmatpush.msra.mxu1 %v614_v29  ;;  %v468_v54 = vld [vmem:[%s1596_s11] sm:$0x3]  ;;  %v829_v29 = vld [vmem:[#allocation19 + $0x30] sm:$0xff] }
  0x83   :  { %803 = vmatpush.msra.mxu0 %v730_v51  ;;  %783 = vmatpush.msra.mxu3 %v762_v57  ;;  %v470_v56 = vperm.slane %v468_v54, 0  ;;  %v325_v57 = vld [vmem:[%s1593_s8] sm:$0x3] }
  0x84   :  { %765 = vmatpush.msrb.mxu2 %v744_v58  ;;  %707 = vmatpush.msra.mxu1 %v613_v33  ;;  %v328_v9 = vperm.slane %v325_v57, 1  ;;  %v825_v33 = vld [vmem:[#allocation19 + $0x10] sm:$0xff] }
  0x85   :  { %804 = vmatpush.msra.mxu0 %v729_v55  ;;  %784 = vmatpush.msra.mxu3 %v761_v61 }
  0x86   :  { %766 = vmatpush.msrb.mxu2 %v743_v62  ;;  %708 = vmatpush.msra.mxu1 %v612_v37  ;;  %v876_v37 = vld [vmem:[#allocation20 + $0x70] sm:$0xff] }
  0x87   :  { %805 = vmatpush.msra.mxu0 %v728_v59  ;;  %785 = vmatpush.msra.mxu3 %v760_v1  ;;  %v471_v59 = vperm.slane %v468_v54, 1 }
  0x88   :  { %767 = vmatpush.msrb.mxu2 %v742_v2 }
  0x89   :  { %806 = vmatpush.msra.mxu0 %v727_v63  ;;  %786 = vmatpush.msra.mxu3 %v759_v5  ;;  %v327_v63 = vperm.slane %v325_v57, 0 }
  0x8a   :  { %768 = vmatpush.msrb.mxu2 %v741_v6 }
  0x8b   :  { %807 = vmatpush.msra.mxu0 %v726_v3  ;;  %787 = vmatpush.msra.mxu3 %v758_v10 }
  0x8c   :  { %769 = vmatpush.msrb.mxu2 %v740_v11 }
  0x8d   :  { %808 = vmatpush.msra.mxu0 %v725_v8  ;;  %788 = vmatpush.msra.mxu3 %v757_v14 }
  0x8e   :  { %770 = vmatpush.msrb.mxu2 %v739_v15 }
  0x8f   :  { %809 = vmatpush.msra.mxu0 %v724_v12  ;;  %789 = vmatpush.msra.mxu3 %v756_v18 }
  0x90   :  { %771 = vmatpush.msrb.mxu2 %v738_v19 }
  0x91   :  { %810 = vmatpush.msra.mxu0 %v723_v16  ;;  %790 = vmatpush.msra.mxu3 %v755_v22 }
  0x92   :  { %772 = vmatpush.msrb.mxu2 %v737_v23 }
  0x93   :  { %811 = vmatpush.msra.mxu0 %v722_v20  ;;  %791 = vmatpush.msra.mxu3 %v754_v26 }
  0x94   :  { %773 = vmatpush.msrb.mxu2 %v736_v27 }
  0x95   :  { %812 = vmatpush.msra.mxu0 %v721_v24  ;;  %792 = vmatpush.msra.mxu3 %v753_v30  ;;  %v828_v30 = vld [vmem:[#allocation19 + $0x28] sm:$0xff] }
  0x96   :  { %774 = vmatpush.msrb.mxu2 %v735_v31  ;;  %v827_v31 = vld [vmem:[#allocation19 + $0x20] sm:$0xff] }
  0x97   :  { %813 = vmatpush.msra.mxu0 %v720_v28  ;;  %793 = vmatpush.msra.mxu3 %v752_v34  ;;  %v830_v28 = vld [vmem:[#allocation19 + $0x38] sm:$0xff]  ;;  %v824_v34 = vld [vmem:[#allocation19 + $0x8] sm:$0xff] }
  0x98   :  { %775 = vmatpush.msrb.mxu2 %v734_v35  ;;  %843 = vmatpush.msrb.mxu1 %v830_v28  ;;  %v823_v35 = vld [vmem:[#allocation19] sm:$0xff] }
  0x99   :  { %814 = vmatpush.msra.mxu0 %v719_v32  ;;  %794 = vmatpush.msra.mxu3 %v751_v38  ;;  %v826_v32 = vld [vmem:[#allocation19 + $0x18] sm:$0xff]  ;;  %v875_v38 = vld [vmem:[#allocation20 + $0x68] sm:$0xff] }
  0x9a   :  { %776 = vmatpush.msrb.mxu2 %v733_v39  ;;  %844 = vmatpush.msrb.mxu1 %v829_v29  ;;  %v874_v39 = vld [vmem:[#allocation20 + $0x60] sm:$0xff] }
  0x9b   :  { %815 = vmatpush.msra.mxu0 %v718_v36  ;;  %795 = vmatpush.msra.mxu3 %v750_v41  ;;  %v877_v36 = vld [vmem:[#allocation20 + $0x78] sm:$0xff]  ;;  %v872_v41 = vld [vmem:[#allocation20 + $0x50] sm:$0xff] }
  0x9c   :  { %777 = vmatpush.msrb.mxu2 %v732_v42  ;;  %845 = vmatpush.msrb.mxu1 %v828_v30  ;;  %v871_v42 = vld [vmem:[#allocation20 + $0x48] sm:$0xff] }
  0x9d   :  { %816 = vmatpush.msra.mxu0 %v717_v40  ;;  %796 = vmatpush.msra.mxu3 %v749_v44  ;;  %v873_v40 = vld [vmem:[#allocation20 + $0x58] sm:$0xff]  ;;  %v994_v44 = vld [vmem:[%s1599_s14] ss:$0 sm:$0xff] }
  0x9e   :  { %778 = vmatpush.msrb.mxu2 %v731_v45  ;;  %846 = vmatpush.msrb.mxu1 %v827_v31  ;;  %v869_v45 = vld [vmem:[#allocation20 + $0x38] sm:$0xff] }
  0x9f   :  { %817 = vmatpush.msra.mxu0 %v716_v43  ;;  %797 = vmatpush.msra.mxu3 %v748_v47  ;;  %v870_v43 = vld [vmem:[#allocation20 + $0x40] sm:$0xff]  ;;  %v868_v47 = vld [vmem:[#allocation20 + $0x30] sm:$0xff] }
  0xa0   :  { %847 = vmatpush.msrb.mxu1 %v826_v32 }
  0xa1   :  { %818 = vmatpush.msra.mxu0 %v715_v46  ;;  %798 = vmatpush.msra.mxu3 %v747_v49  ;;  %v867_v49 = vld [vmem:[#allocation20 + $0x28] sm:$0xff] }
  0xa2   :  { %848 = vmatpush.msrb.mxu1 %v825_v33 }
  0xa4   :  { %849 = vmatpush.msrb.mxu1 %v824_v34 }
  0xa6   :  { %850 = vmatpush.msrb.mxu1 %v823_v35 }
  0xc3   :  { %v291_v48 = vpop.f32.mrf.mxu0 }
  0xc4   :  { %v292_v6 = vadd.f32 %v993_v60, %v291_v48 }
  0xc6   :  { %v294_v19 = vmax.f32 %v292_v6, 0.0 }
  0xc8   :  { %v312_v50 = vpop.f32.mrf.mxu3 }
  0xc9   :  { %v313_v8 = vadd.f32 %v993_v60, %v312_v50  ;;  %v865_v60 = vld [vmem:[#allocation20 + $0x18] sm:$0xff] }
  0xcb   :  { %v315_v20 = vmax.f32 %v313_v8, 0.0 }
  0xcd   :  { %v316_v25 = vmax.f32 %v294_v19, %v315_v20  ;;  %v915_v20 = vld [vmem:[%s1606_s21 + $0x8] sm:$0xff] }
  0xd3   :  { %v351_v51 = vpop.f32.mrf.mxu2 }
  0xd4   :  { %v352_v11 = vadd.f32 %v351_v51, %v327_v63 }
  0xd6   :  { %v393_v52 = vpop.f32.mrf.mxu0  ;;  %v374_v21 = vmax.f32 %v352_v11, 0.0  ;;  %v996_v11 = vld [vmem:[%s1605_s20] ss:$0 sm:$0xff]  ;;  %s1345_s20 = smov [#allocation22]  }
  0xd7   :  { %v394_v12 = vadd.f32 %v393_v52, %v327_v63  ;;  %v866_v52 = vld [vmem:[#allocation20 + $0x20] sm:$0xff]  ;;  %s946_s27 = sshll.u32 %s1345_s20, 4  ;;  %s947_s27 = int_to_ptr.vmem [resolvable:$true] %s946_s27 }
  0xd8   :  { %v371_v53 = vpop.f32.mrf.mxu3  ;;  %v862_v63 = vld [vmem:[#allocation20] sm:$0xff] }
  0xd9   :  { %v372_v16 = vadd.f32 %v371_v53, %v328_v9  ;;  %v416_v22 = vmax.f32 %v394_v12, 0.0 }
  0xda   :  { %v413_v55 = vpop.f32.mrf.mxu1 }
  0xdb   :  { %v414_v17 = vadd.f32 %v413_v55, %v328_v9  ;;  %v375_v23 = vmax.f32 %v372_v16, 0.0  ;;  %v418_v26 = vmax.f32 %v374_v21, %v416_v22  ;;  %v914_v21 = vld [vmem:[%s1606_s21] sm:$0xff] }
  0xdd   :  { %v417_v24 = vmax.f32 %v414_v17, 0.0 }
  0xde   :  { %v495_v58 = vpop.f32.mrf.mxu2 }
  0xdf   :  { %v496_v61 = vadd.f32 %v495_v58, %v470_v56  ;;  %v537_v62 = vpop.f32.mrf.mxu0  ;;  %v419_v27 = vmax.f32 %v375_v23, %v417_v24 }
  0xe0   :  { %v538_v0 = vadd.f32 %v537_v62, %v470_v56  ;;  %v863_v62 = vld [vmem:[#allocation20 + $0x8] sm:$0xff] }
  0xe1   :  { %v518_v1 = vmax.f32 %v496_v61, 0.0  ;;  %v864_v61 = vld [vmem:[#allocation20 + $0x10] sm:$0xff] }
  0xe2   :  { %v515_v2 = vpop.f32.mrf.mxu3  ;;  %v560_v3 = vmax.f32 %v538_v0, 0.0 }
  0xe3   :  { %v516_v4 = vadd.f32 %v515_v2, %v471_v59  ;;  %v557_v5 = vpop.f32.mrf.mxu1 }
  0xe4   :  { %v558_v10 = vadd.f32 %v557_v5, %v471_v59  ;;  %v562_v13 = vmax.f32 %v518_v1, %v560_v3  ;;  %v995_v5 = vld [vmem:[%s1603_s18] ss:$0 sm:$0xff] }
  0xe5   :  { %v519_v14 = vmax.f32 %v516_v4, 0.0 }
  0xe6   :  { %v561_v15 = vmax.f32 %v558_v10, 0.0  ;;  %648 = vmatmul.f32.vlgmr.msra.gmra.mxu2 %v562_v13  ;;  %689 = vmatmul.f32.vlgmr.msrb.gmra.mxu0 %v562_v13 }
  0xe7   :  { %933 = vmatpush.msra.mxu2 %v915_v20 }
  0xe8   :  { %v563_v18 = vmax.f32 %v519_v14, %v561_v15 }
  0xe9   :  { %934 = vmatpush.msra.mxu2 %v914_v21 }
  0xea   :  { %668 = vmatmul.f32.vlgmr.msrb.gmra.mxu3 %v563_v18  ;;  %709 = vmatmul.f32.vlgmr.msra.gmra.mxu1 %v563_v18 }
  0xeb   :  { %882 = vmatpush.msra.mxu1 %v877_v36 }
  0xed   :  { %883 = vmatpush.msra.mxu1 %v876_v37 }
  0xee   :  { %779 = vmatmul.f32.vlgmr.msrb.gmra.mxu2 %v418_v26  ;;  %819 = vmatmul.f32.vlgmr.msra.gmra.mxu0 %v316_v25 }
  0xef   :  { %884 = vmatpush.msra.mxu1 %v875_v38 }
  0xf1   :  { %885 = vmatpush.msra.mxu1 %v874_v39 }
  0xf2   :  { %799 = vmatmul.f32.vlgmr.msra.gmra.mxu3 %v419_v27 }
  0xf3   :  { %886 = vmatpush.msra.mxu1 %v873_v40 }
  0xf5   :  { %887 = vmatpush.msra.mxu1 %v872_v41 }
  0xf7   :  { %888 = vmatpush.msra.mxu1 %v871_v42 }
  0xf9   :  { %889 = vmatpush.msra.mxu1 %v870_v43 }
  0xfb   :  { %890 = vmatpush.msra.mxu1 %v869_v45 }
  0xfd   :  { %891 = vmatpush.msra.mxu1 %v868_v47 }
  0xff   :  { %892 = vmatpush.msra.mxu1 %v867_v49 }
 0x101   :  { %893 = vmatpush.msra.mxu1 %v866_v52 }
 0x103   :  { %894 = vmatpush.msra.mxu1 %v865_v60 }
 0x105   :  { %895 = vmatpush.msra.mxu1 %v864_v61 }
 0x107   :  { %896 = vmatpush.msra.mxu1 %v863_v62 }
 0x109   :  { %897 = vmatpush.msra.mxu1 %v862_v63 }
 0x163   :  { %v690_v46 = vpop.f32.mrf.mxu0 }
 0x164   :  { %v691_v48 = vadd.f32 %v994_v44, %v690_v46 }
 0x167   :  { %v710_v50 = vpop.f32.mrf.mxu1 }
 0x168   :  { %v711_v54 = vadd.f32 %v710_v50, %v691_v48 }
 0x169   :  { %v649_v51 = vpop.f32.mrf.mxu2 }
 0x16a   :  { %v650_v53 = vadd.f32 %v994_v44, %v649_v51  ;;  %v713_v57 = vmax.f32 %v711_v54, 0.0 }
 0x16b   :  { %v820_v3 = vpop.f32.mrf.mxu0 }
 0x16d   :  { %v669_v55 = vpop.f32.mrf.mxu3 }
 0x16e   :  { %v670_v56 = vadd.f32 %v669_v55, %v650_v53 }
 0x170   :  { %v672_v58 = vmax.f32 %v670_v56, 0.0 }
 0x171   :  { %v780_v1 = vpop.f32.mrf.mxu2 }
 0x172   :  { %v714_v59 = vmax.f32 %v672_v58, %v713_v57 }
 0x174   :  { %974 = vmatmul.msk.f32.vlgmr.msrb.gmra.mxu1 %vm831_vm2, %v714_v59 }
 0x175   :  { %v800_v0 = vpop.f32.mrf.mxu3 }
 0x176   :  { %v801_v2 = vadd.f32 %v800_v0, %v780_v1 }
 0x178   :  { %v821_v4 = vadd.f32 %v820_v3, %v801_v2 }
 0x1f1   :  { %v852_v6 = vpop.f32.mrf.mxu1 }
 0x1f2   :  { %v855_v8 = vadd.f32 %v852_v6, %v821_v4 }
 0x1f4   :  { %v860_v9 = vadd.f32 %v995_v5, %v855_v8 }
 0x1f6   :  { %v861_v10 = vmax.f32 %v860_v9, 0.0 }
 0x1f8   :  { %898 = vmatmul.f32.vlgmr.msra.gmra.mxu1 %v861_v10 }
 0x275   :  { %v899_v12 = vpop.f32.mrf.mxu1 }
 0x276   :  { %v900_v13 = vadd.f32 %v996_v11, %v899_v12 }
 0x278   :  { %v903_v14 = vsel %vm902_vm3, %v900_v13, -inf }
 0x279   :  { %904 = vmax.xlane.f32.xlu0 %v903_v14 }
 0x2ec   :  { %v905_v15 = vpop.xlane.xlu0 %904 }
 0x2ed   :  { %v906_v16 = vsub.f32 %v900_v13, %v905_v15 }
 0x2ef   :  { %v907_v17 = vmul.f32 1.442695, %v906_v16 }
 0x2f1   :  { %997 = vpow2.f32 %v907_v17 }
 0x2f7   :  { %v998_v18 = vpop.eup %997 }
 0x2f8   :  { %v909_v19 = vsel %vm902_vm3, %v998_v18, 0.0 }
 0x2f9   :  { %910 = vadd.xlane.f32.xlu0 %v909_v19 }
 0x36c   :  { %v911_v22 = vpop.xlane.xlu0 %910 }
 0x36d   :  { %999 = vrcp.f32 %v911_v22 }
 0x373   :  { %v1000_v23 = vpop.eup %999 }
 0x374   :  { %v913_v24 = vmul.f32 %v1000_v23, %v998_v18 }
 0x376   :  { %975 = vmatmul.msk.f32.vlgmr.msra.gmra.mxu2 %vm270_vm0, %v913_v24 }
 0x3f9   :  { %v936_v25 = vpop.f32.mrf.mxu2 }
 0x3fa   :  { %v937_v26 = vadd.f32 %v936_v25, %v1536_v7 }
 0x3fc   :  { %940 = vst.msk [vmem:[#allocation22] sm:$0x3] %vm939_vm4, %v937_v26 }
 0x3fd   :  { %951 = dma.vmem_to_hbm [thread:$0]  %s947_s27, 32, %s949_s23, [#allocation4]  }
 0x3fe   :  { %1327 = dma.done.wait [#allocation4], 32  }
 0x3ff   :  { %1328 = vsyncadd [#allocation4], 4294967264 }
 0x400   :  { %956 = vsyncpa [#allocation3], 1 }
 0x401   :  { %957 = vsyncpa [#allocation6], 1 }
 0x402   :  { %958 = vsyncpa [#allocation9], 1 }
 0x403   :  { %959 = vsyncpa [#allocation12], 1 }
 0x404   :  { %960 = vsyncpa [#allocation15], 1 }
 0x405   :  { %961 = vsyncpa [#allocation18], 1 }
 0x406   :  { %962 = vsyncpa [#allocation21], 1 }
 0x407   :  { %963 = vsyncpa [#allocation4], 1 }

</bundles_post_ra>
